<compile_context>
chip_gen: v5e
topology: v5e:2x2
jax: 0.10.0
libtpu: 0.0.40
codegen_flags: <defaults>
</compile_context>

<pallas_src>
import functools
import math

import jax
import jax.numpy as jnp
from jax.experimental import pallas as pl
from jax.experimental.pallas import tpu as pltpu


# ----------------------------------------------------------------------------
# Parameter construction (mirrors generate_filter / __init__)
# ----------------------------------------------------------------------------
def generate_filter(start, end, size):
    return [[0.0 if i + j > end or i + j < start else 1.0 for j in range(size)]
            for i in range(size)]


# ----------------------------------------------------------------------------
# Kernel: elementwise broadcast multiply (hot path)
# ----------------------------------------------------------------------------
def _filter_kernel(x_ref, filt_ref, o_ref):
    # x_ref    : VMEM (TBC, L)  -- lane-dense slab of flattened (b, c) rows
    # filt_ref : VMEM (1, L)    -- precomputed, pre-scaled filter (x.dtype)
    # o_ref    : VMEM (TBC, L)
    o_ref[...] = (x_ref[...] * filt_ref[...]).astype(o_ref.dtype)


def _block_target_bytes():
    """Per-generation x-block byte target.

    Double-buffered in + out is ~4x the block, which must stay inside the
    scoped-VMEM default: 16 MiB on v5e, 32 MiB on v6e/v7x (v7x physical VMEM
    is only 64 MiB, so do NOT scale up further).
    """
    try:
        kind = jax.devices()[0].device_kind.lower()
    except Exception:
        kind = ""
    if "v5" in kind:
        return 3 * 1024 * 1024    # 4x ~= 12 MiB  < 16 MiB scoped default
    return 7 * 1024 * 1024        # 4x ~= 28 MiB  < 32 MiB scoped default


# ----------------------------------------------------------------------------
# Wrapper
# ----------------------------------------------------------------------------
@functools.partial(jax.jit,
                   static_argnames=("use_learnable", "norm", "force_pallas"))
def filter_forward(x, base, learnable, ft_num, *, use_learnable=False,
                   norm=False, force_pallas=False):
    """Apply the Filter module to x (B, C, H, W)."""
    B, C, H, W = x.shape
    assert base.shape == (H, W)
    HW = H * W
    N = B * C

    # Hoist all invariant filter math out of the kernel (computed once by XLA,
    # not once per grid step). Static-flag specialization: the non-learnable
    # path never touches sigmoid, the non-norm path never divides.
    filt = base.astype(jnp.float32)
    if use_learnable:
        filt = filt + (2.0 * jax.nn.sigmoid(learnable.astype(jnp.float32)) - 1.0)
    if norm:
        # NOTE: ft_num == 0 (empty band) yields inf/nan, same as the PyTorch ref.
        filt = filt / ft_num.astype(jnp.float32)
    filt = filt.astype(x.dtype)          # keep the kernel multiply in x.dtype

    # Small-input fallback: pallas_call launch + pipeline prologue dwarfs the
    # actual HBM traffic below ~1 MiB; XLA's fused elementwise is faster.
    total_bytes = x.size * x.dtype.itemsize
    if not force_pallas and total_bytes < (1 << 20):
        return x * filt[None, None]

    # Lane-dense layout: flatten to (rows, L) with L a multiple of 128 (or the
    # full last dim) so stores stay unmasked. If HW is not a multiple of 128,
    # group consecutive (b, c) rows; the filter is tiled to match.
    reps = 1
    if HW % 128 != 0:
        g = 128 // math.gcd(HW, 128)
        if N % g == 0:
            reps = g
        # else: fall back to last dim == HW (still correct; HW equals the full
        # array dim so the (8,128) BlockSpec rule is satisfied).
    rows = N // reps
    L = reps * HW
    x_flat = x.reshape(rows, L)
    filt_flat = jnp.tile(filt.reshape(1, HW), (1, reps)) if reps > 1 \
        else filt.reshape(1, HW)

    # Block sizing: per-generation byte target, rows a multiple of 8.
    bytes_per_row = L * x_flat.dtype.itemsize
    if rows <= 8:
        tbc = rows                                    # == full dim, rule OK
    else:
        tbc = min(rows, max(8, _block_target_bytes() // max(1, bytes_per_row)))
        tbc = max(8, (tbc // 8) * 8)                  # multiple of 8 sublanes
        if rows >= 16:
            # Guarantee >= 2 grid programs so "parallel" can use both v7x TCs.
            half = ((-(-rows // 2)) + 7) // 8 * 8
            tbc = min(tbc, half)

    grid = (pl.cdiv(rows, tbc),)   # ragged last block: OOB writes are dropped

    out_flat = pl.pallas_call(
        _filter_kernel,
        out_shape=jax.ShapeDtypeStruct((rows, L), x.dtype),
        grid=grid,
        in_specs=[
            pl.BlockSpec((tbc, L), lambda i: (i, 0)),   # x rows
            pl.BlockSpec((1, L), lambda i: (0, 0)),     # pre-scaled filter
        ],
        out_specs=pl.BlockSpec((tbc, L), lambda i: (i, 0)),
        compiler_params=pltpu.CompilerParams(
            dimension_semantics=("parallel",)),
    )(x_flat, filt_flat)

    return out_flat.reshape(B, C, H, W)


# ----------------------------------------------------------------------------
# Pure-JAX reference (for correctness check)
# ----------------------------------------------------------------------------
def filter_reference(x, base, learnable, ft_num, *, use_learnable=False, norm=False):
    filt = base + (2.0 * jax.nn.sigmoid(learnable) - 1.0) if use_learnable else base
    y = x * filt
    if norm:
        y = y / ft_num
    return y


if __name__ == "__main__":
    # Module config: Filter(size=16, band_start=0, band_end=16,
    #                       use_learnable=True, norm=True)
    size = 16
    band_start, band_end = 0, size
    B, C = 2, 4

    key = jax.random.PRNGKey(0)
    kx, kl = jax.random.split(key)

    x = jax.random.normal(kx, (B, C, size, size), dtype=jnp.float32)

    base = jnp.array(generate_filter(band_start, band_end, size), dtype=jnp.float32)
    # learnable ~ N(0, 0.1) as in __init__ (deterministic via PRNGKey)
    learnable = 0.1 * jax.random.normal(kl, (size, size), dtype=jnp.float32)
    ft_num = jnp.sum(base)

    # 1) Force the Pallas kernel path on the small test shape.
    y = filter_forward(x, base, learnable, ft_num,
                       use_learnable=True, norm=True, force_pallas=True)
    y = jax.block_until_ready(y)

    y_ref = filter_reference(x, base, learnable, ft_num,
                             use_learnable=True, norm=True)
    assert y.shape == (B, C, size, size)
    # Hoisting the 1/ft_num scale changes rounding order by <= ~1 ulp -> rtol 1e-5.
    assert jnp.allclose(y, y_ref, atol=1e-6, rtol=1e-5), "mismatch vs reference"

    # 2) Default path (small-input fallback) must also match.
    y_fb = jax.block_until_ready(
        filter_forward(x, base, learnable, ft_num, use_learnable=True, norm=True))
    assert jnp.allclose(y_fb, y_ref, atol=1e-6, rtol=1e-5), "mismatch (fallback)"

    # 3) Non-learnable / non-norm configuration (specialized kernel path).
    y2 = jax.block_until_ready(
        filter_forward(x, base, learnable, ft_num,
                       use_learnable=False, norm=False, force_pallas=True))
    y2_ref = filter_reference(x, base, learnable, ft_num,
                              use_learnable=False, norm=False)
    assert jnp.allclose(y2, y2_ref, atol=1e-6, rtol=1e-5), "mismatch (plain) vs reference"

    print("KERNEL_OK")
</pallas_src>

<mosaic_0001>
module attributes {stable_mosaic.version = 11 : i64} {
  func.func @_filter_kernel(%arg0: i32, %arg1: memref<8x256xf32, #tpu.memory_space<vmem>>, %arg2: memref<1x256xf32, #tpu.memory_space<vmem>>, %arg3: memref<8x256xf32, #tpu.memory_space<vmem>>) attributes {dimension_semantics = [#tpu.dimension_semantics<parallel>], iteration_bounds = array<i64: 1>, scalar_prefetch = 0 : i64, scratch_operands = 0 : i64, tpu.core_type = #tpu.core_type<tc>, window_params = [{transform_indices = @transform_0, window_bounds = array<i64: 8, 256>}, {pipeline_mode = #tpu.pipeline_mode<synchronous>, transform_indices = @transform_1, window_bounds = array<i64: 1, 256>}, {transform_indices = @transform_2, window_bounds = array<i64: 8, 256>}]} {
    %c0 = arith.constant 0 : index
    %c0_0 = arith.constant 0 : index
    %0 = vector.load %arg1[%c0, %c0_0] : memref<8x256xf32, #tpu.memory_space<vmem>>, vector<8x256xf32>
    %c0_1 = arith.constant 0 : index
    %c0_2 = arith.constant 0 : index
    %1 = vector.load %arg2[%c0_1, %c0_2] : memref<1x256xf32, #tpu.memory_space<vmem>>, vector<1x256xf32>
    %2 = vector.broadcast %1 : vector<1x256xf32> to vector<8x256xf32>
    %3 = arith.mulf %0, %2 : vector<8x256xf32>
    %c0_3 = arith.constant 0 : index
    %c0_4 = arith.constant 0 : index
    %4 = vector.load %arg3[%c0_3, %c0_4] : memref<8x256xf32, #tpu.memory_space<vmem>>, vector<8x256xf32>
    tpu.vector_store %arg3[%c0_3, %c0_4], %3 {strides = array<i32>} : memref<8x256xf32, #tpu.memory_space<vmem>>, vector<8x256xf32>,
    return
  }
  func.func @transform_0(%arg0: i32) -> (i32, i32) {
    %c0_i32 = arith.constant 0 : i32
    %c0_i32_0 = arith.constant 0 : i32
    return %arg0, %c0_i32 : i32, i32
  }
  func.func @transform_1(%arg0: i32) -> (i32, i32) {
    %c0_i32 = arith.constant 0 : i32
    %c0_i32_0 = arith.constant 0 : i32
    %c0_i32_1 = arith.constant 0 : i32
    return %c0_i32, %c0_i32_0 : i32, i32
  }
  func.func @transform_2(%arg0: i32) -> (i32, i32) {
    %c0_i32 = arith.constant 0 : i32
    %c0_i32_0 = arith.constant 0 : i32
    return %arg0, %c0_i32 : i32, i32
  }
}

</mosaic_0001>

<bundles_post_ra>
// kernel: filter_forward.1
= control target key start
LH: loop header
LB: loop body
LE: loop exit
PB: predicated region body
PF: predicated region fallthrough
CT: control target
= control target key end

     0   :  { %s57_s0 = inlined_call_operand.vmem [shape: f32[8,256], index: 0, kind: input, shape index: {}]   ;;  %s58_s1 = inlined_call_operand.vmem [shape: f32[1,256], index: 1, kind: input, shape index: {}]   ;;  %s59_s2 = inlined_call_operand.vmem [shape: f32[8,256], index: 2, kind: output, shape index: {}]  }
   0x1   :  { %v11_v0 = vld [vmem:[%s57_s0] sm:$0xff]  ;;  %v12_v2 = vld [vmem:[%s57_s0 + $0x8] sm:$0xff] }
   0x2   :  { %v13_v1 = vld [vmem:[%s58_s1] sm:$0x3] }
   0x3   :  { %v15_v3 = vperm.slane %v13_v1, 0  ;;  %v16_v4 = vperm.slane %v13_v1, 1 }
   0x5   :  { %v19_v5 = vmul.f32 %v15_v3, %v11_v0  ;;  %v20_v6 = vmul.f32 %v16_v4, %v12_v2 }
   0x7   :  { %21 = vst [vmem:[%s59_s2] sm:$0xff] %v19_v5 }
   0x8   :  { %22 = vst [vmem:[%s59_s2 + $0x8] sm:$0xff] %v20_v6 }

</bundles_post_ra>
